<compile_context>
chip_gen: v7x
topology: tpu7x:2x2x1
jax: 0.10.0
libtpu: 0.0.40
codegen_flags: <defaults>
</compile_context>

<pallas_src>
import functools

import jax
import jax.numpy as jnp
from jax import lax
from jax.experimental import pallas as pl
from jax.experimental.pallas import tpu as pltpu


def _compression_memory_bank_kernel(mem_ref, x_ref, out_ref, *, approx_recip):
    mem = mem_ref[...]          # (M, D) f32 or bf16
    x = x_ref[...]              # (N, D) f32 or bf16

    # alignment_scores = memory_bank @ x.T  -> (M, N)
    # Contract on D for both operands (no transposed copy of x), f32 accumulate.
    scores = lax.dot_general(
        mem, x,
        dimension_numbers=(((1,), (1,)), ((), ())),
        preferred_element_type=jnp.float32,
    )                                                     # (M, N) f32  (MXU)

    # Numerically stable softmax over dim=1 (the N axis), kept in f32.
    row_max = jnp.max(scores, axis=1, keepdims=True)      # (M, 1)
    exps = jnp.exp(scores - row_max)                      # (M, N) f32  (EUP)
    denom = jnp.sum(exps, axis=1, keepdims=True)          # (M, 1) f32

    # Unnormalized retrieval, then fold the softmax normalization into one
    # (M, 1)-broadcast scale on the (M, D) result instead of scaling (M, N).
    retrieved = jnp.dot(
        exps.astype(x.dtype), x, preferred_element_type=jnp.float32
    )                                                     # (M, D) f32  (MXU)
    inv_denom = pl.reciprocal(denom, approx=approx_recip) # EUP when approx=True
    out_ref[...] = (retrieved * inv_denom).astype(out_ref.dtype)


def compression_memory_bank(
    memory_bank: jax.Array, x: jax.Array, *, matmul_dtype=None
) -> jax.Array:
    """memory_bank: (M, D), x: (N, D)  ->  (M, D)

    matmul_dtype: optional dtype (e.g. jnp.bfloat16) for the MXU operands.
    Accumulation and all softmax math stay in float32; output dtype follows x.
    """
    M, D = memory_bank.shape
    N, D2 = x.shape
    assert D == D2, "embedding dims must match"

    out_dtype = x.dtype
    if matmul_dtype is not None:
        # Cast in the wrapper so HBM->VMEM traffic is already narrow.
        memory_bank = memory_bank.astype(matmul_dtype)
        x = x.astype(matmul_dtype)

    # Exact reciprocal for the f32 path (preserves reference semantics tightly);
    # approx EUP reciprocal on the bf16 fast path where its error is negligible.
    approx_recip = memory_bank.dtype == jnp.bfloat16

    kernel = functools.partial(
        _compression_memory_bank_kernel, approx_recip=approx_recip
    )

    # No grid: single invocation, whole arrays resident in VMEM, no pipeline
    # setup or double buffering overhead.
    return pl.pallas_call(
        kernel,
        out_shape=jax.ShapeDtypeStruct((M, D), out_dtype),
        in_specs=[
            pl.BlockSpec(memory_space=pltpu.MemorySpace.VMEM),
            pl.BlockSpec(memory_space=pltpu.MemorySpace.VMEM),
        ],
        out_specs=pl.BlockSpec(memory_space=pltpu.MemorySpace.VMEM),
    )(memory_bank, x)


def _reference(memory_bank, x):
    scores = memory_bank @ x.T
    probs = jax.nn.softmax(scores, axis=1)
    return probs @ x


if __name__ == "__main__":
    memory_size = 8     # M: number of memory vectors
    embedding_dim = 32  # D: size of each memory vector
    seq_len = 16        # N: number of input token vectors

    key = jax.random.PRNGKey(0)
    k_mem, k_x = jax.random.split(key)

    # Deterministic parameter init: nn.init.normal_(memory_bank) -> N(0, 1)
    memory_bank = jax.random.normal(
        k_mem, (memory_size, embedding_dim), dtype=jnp.float32
    )
    x = jax.random.normal(k_x, (seq_len, embedding_dim), dtype=jnp.float32)

    ref = _reference(memory_bank, x)

    # 1) Exact f32 path: matches the PyTorch module semantics.
    out_f32 = jax.block_until_ready(compression_memory_bank(memory_bank, x))
    assert out_f32.shape == (memory_size, embedding_dim)
    assert jnp.allclose(out_f32, ref, atol=1e-4, rtol=1e-4), "f32 mismatch vs reference"

    # 2) bf16-MXU fast path (f32 accumulation + f32 softmax): perf path for
    #    v5e / v6e / v7x. Small, expected deviation from the f32 reference.
    out_bf16 = jax.block_until_ready(
        compression_memory_bank(memory_bank, x, matmul_dtype=jnp.bfloat16)
    )
    assert out_bf16.shape == (memory_size, embedding_dim)
    assert jnp.allclose(out_bf16, ref, atol=0.15, rtol=0.1), "bf16 mismatch vs reference"

    print("KERNEL_OK")
</pallas_src>

<mosaic_0001>
module attributes {stable_mosaic.version = 11 : i64} {
  func.func @_compression_memory_bank_kernel(%arg0: memref<8x32xf32, #tpu.memory_space<vmem>>, %arg1: memref<16x32xf32, #tpu.memory_space<vmem>>, %arg2: memref<8x32xf32, #tpu.memory_space<vmem>>) attributes {dimension_semantics = [], scalar_prefetch = 0 : i64, scratch_operands = 0 : i64, tpu.core_type = #tpu.core_type<tc>} {
    %c0 = arith.constant 0 : index
    %c0_0 = arith.constant 0 : index
    %0 = vector.load %arg0[%c0, %c0_0] : memref<8x32xf32, #tpu.memory_space<vmem>>, vector<8x32xf32>
    %c0_1 = arith.constant 0 : index
    %c0_2 = arith.constant 0 : index
    %1 = vector.load %arg1[%c0_1, %c0_2] : memref<16x32xf32, #tpu.memory_space<vmem>>, vector<16x32xf32>
    %cst = arith.constant dense<0.000000e+00> : vector<8x16xf32>
    %2 = tpu.matmul %0, %1, %cst {dimension_numbers = #tpu.dot_dimension_numbers<[1], [1], [0], [0], [0, 0, 1, 0], [], []>} : vector<8x32xf32>, vector<16x32xf32>, vector<8x16xf32> -> vector<8x16xf32>
    %cst_3 = arith.constant dense<0xFF800000> : vector<8xf32>
    %3 = vector.multi_reduction <maximumf>, %2, %cst_3 [1] : vector<8x16xf32> to vector<8xf32>
    %4 = vector.shape_cast %3 : vector<8xf32> to vector<8x1xf32>
    %5 = vector.broadcast %4 : vector<8x1xf32> to vector<8x16xf32>
    %6 = arith.subf %2, %5 : vector<8x16xf32>
    %7 = math.exp %6 : vector<8x16xf32>
    %cst_4 = arith.constant dense<0.000000e+00> : vector<8xf32>
    %8 = vector.multi_reduction <add>, %7, %cst_4 [1] : vector<8x16xf32> to vector<8xf32>
    %9 = vector.shape_cast %8 : vector<8xf32> to vector<8x1xf32>
    %cst_5 = arith.constant dense<0.000000e+00> : vector<8x32xf32>
    %10 = tpu.matmul %7, %1, %cst_5 {dimension_numbers = #tpu.dot_dimension_numbers<[1], [0], [0], [1], [0, 0, 1, 1], [], []>} : vector<8x16xf32>, vector<16x32xf32>, vector<8x32xf32> -> vector<8x32xf32>
    %11 = tpu.reciprocal %9 : vector<8x1xf32> -> vector<8x1xf32>
    %12 = vector.broadcast %11 : vector<8x1xf32> to vector<8x32xf32>
    %13 = arith.mulf %10, %12 : vector<8x32xf32>
    %c0_6 = arith.constant 0 : index
    %c0_7 = arith.constant 0 : index
    %14 = vector.load %arg2[%c0_6, %c0_7] : memref<8x32xf32, #tpu.memory_space<vmem>>, vector<8x32xf32>
    tpu.vector_store %arg2[%c0_6, %c0_7], %13 {strides = array<i32>} : memref<8x32xf32, #tpu.memory_space<vmem>>, vector<8x32xf32>,
    return
  }
}

</mosaic_0001>

<bundles_post_ra>
// kernel: tpu_custom_call.1
= control target key start
LH: loop header
LB: loop body
LE: loop exit
PB: predicated region body
PF: predicated region fallthrough
CT: control target
= control target key end

     0   :  { %7 = vsyncpa [#allocation3], 0  ;;  %s408_s0 = inlined_call_operand.hbm [shape: f32[8,32], index: 0, kind: input, shape index: {}]   ;;  %s409_s1 = inlined_call_operand.hbm [shape: f32[16,32], index: 1, kind: input, shape index: {}]   ;;  %s410_s2 = inlined_call_operand.hbm [shape: f32[8,32], index: 2, kind: output, shape index: {}]  }
   0x1   :  { %8 = vsyncpa [#allocation6], 0 }
   0x2   :  { %9 = vsyncpa [#allocation4], 0  ;;  %s338_s9 = smov [#allocation2]   ;;  %s339_s11 = smov [#allocation5]  }
   0x3   :  { %s16_s10 = sshll.u32 %s338_s9, 4  ;;  %s25_s12 = sshll.u32 %s339_s11, 4  ;;  %s17_s10 = int_to_ptr.vmem [resolvable:$true] %s16_s10  ;;  %s361_s12 = int_to_ptr.vmem [resolvable:$true] %s25_s12 }
   0x4   :  { %s266_s15 = scalar_lea.hbm %s408_s0, 128 }
   0x5   :  { %p267_p0 = scmp.ne.s32.totalorder %s408_s0, %s266_s15  ;;  %p270_p1 = scmp.lt.u32.totalorder %s266_s15, %s408_s0 }
   0x7   :  { %p272_p2 = pnand %p270_p1, %p267_p0 }
   0x9   :  { %275 = shalt.err (!%p272_p2)
}
   0xa   :  { %s276_s20 = scalar_lea.vmem %s17_s10, 128  ;;  %p281_p4 = scmp.lt.s32.totalorder %s17_s10, %s17_s10 }
   0xb   :  { %p277_p3 = scmp.ne.s32.totalorder %s17_s10, %s276_s20  ;;  %p282_p5 = scmp.lt.s32.totalorder %s276_s20, %s276_s20 }
   0xd   :  { %p283_p6 = por %p282_p5, %p281_p4 }
   0xf   :  { %p284_p7 = pnand %p283_p6, %p277_p3 }
  0x11   :  { %287 = shalt.err (!%p284_p7)
}
  0x12   :  { %19 = dma.hbm_to_vmem [thread:$0]  %s408_s0, 128, %s17_s10, [#allocation3]  }
  0x13   :  { %s288_s25 = scalar_lea.hbm %s409_s1, 256 }
  0x14   :  { %p289_p8 = scmp.ne.s32.totalorder %s409_s1, %s288_s25  ;;  %p292_p9 = scmp.lt.u32.totalorder %s288_s25, %s409_s1 }
  0x16   :  { %p294_p10 = pnand %p292_p9, %p289_p8 }
  0x18   :  { %297 = shalt.err (!%p294_p10)
}
  0x19   :  { %s298_s30 = scalar_lea.vmem %s361_s12, 256  ;;  %p303_p12 = scmp.lt.s32.totalorder %s361_s12, %s361_s12 }
  0x1a   :  { %p299_p11 = scmp.ne.s32.totalorder %s361_s12, %s298_s30  ;;  %p304_p13 = scmp.lt.s32.totalorder %s298_s30, %s298_s30 }
  0x1c   :  { %p305_p0 = por %p304_p13, %p303_p12 }
  0x1e   :  { %p306_p1 = pnand %p305_p0, %p299_p11 }
  0x20   :  { %309 = shalt.err (!%p306_p1)
}
  0x21   :  { %s340_s0 = smov 128   ;;  %s341_s3 = smov 8  }
  0x22   :  { %31 = dma.hbm_to_vmem [thread:$0]  %s409_s1, 256, %s361_s12, [#allocation6], %s340_s0, %s340_s0, %s341_s3  }
  0x23   :  { %332 = dma.done.wait [#allocation3], 128  }
  0x24   :  { %333 = vsyncadd [#allocation3], 4294967168 }
  0x25   :  { %334 = dma.done.wait [#allocation6], 256  }
  0x26   :  { %335 = vsyncadd [#allocation6], 4294967040  ;;  %v342_v0 = vmov 0.0|0.0   ;;  %vm343_vm0 = vmmov 0   ;;  %v344_v1 = vmov 0.0   ;;  %vm41_vm1 = vcmask 261120  }
  0x27   :  { %247 = vmatprep.subr.bf16.mxu0 %v342_v0  ;;  %237 = vmatprep.mubr.msk.f32.mxu0 %vm343_vm0, %v344_v1  ;;  %v39_v2 = vld [vmem:[#allocation5] sm:$0xff]  ;;  %v40_v3 = vld [vmem:[#allocation5 + $0x8] sm:$0xff]  ;;  %vm249_vm2 = vmpackc.low %vm41_vm1, %vm41_vm1  ;;  %vm121_vm3 = vcmask 130048   ;;  %s345_s1 = smov [#allocation7]  }
  0x28   :  { %251 = vmatprep.subr.bf16.mxu1 %v342_v0  ;;  %244 = vmatprep.mubr.msk.f32.mxu1 %vm343_vm0, %v344_v1  ;;  %v248_v4 = vpack.c.bf16 %v40_v3, %v39_v2  ;;  %v38_v5 = vld [vmem:[#allocation2] sm:$0xff]  ;;  %s213_s6 = sshll.u32 %s345_s1, 4  ;;  %s214_s6 = int_to_ptr.vmem [resolvable:$true] %s213_s6 }
  0x29   :  { %s310_s7 = scalar_lea.vmem %s214_s6, 128  ;;  %p315_p3 = scmp.lt.s32.totalorder %s214_s6, %s214_s6 }
  0x2a   :  { %250 = vmatpush3.bf16.xpose.msk.msra.mxu0 %vm249_vm2, %v248_v4  ;;  %253 = vmatpush3.bf16.msra.mxu1 %v248_v4  ;;  %p311_p2 = scmp.ne.s32.totalorder %s214_s6, %s310_s7  ;;  %p316_p4 = scmp.lt.s32.totalorder %s310_s7, %s310_s7 }
  0x2c   :  { %p317_p5 = por %p316_p4, %p315_p3 }
  0x2e   :  { %p318_p6 = pnand %p317_p5, %p311_p2 }
  0x31   :  { %238 = vmatmul.mubr.msk.f32.vlgmr.msra.gmra.mrb[0].mxu0 %vm41_vm1, %v38_v5 }
 0x104   :  { %v117_v6 = vpop.f32.mrb[0].mxu0 }
 0x105   :  { %v239_v7 = vpop.f32.mrb[1].mxu0  ;;  %v122_v8 = vsel %vm121_vm3, %v117_v6, -inf }
 0x106   :  { %123 = vmax.xlane.f32.xlu0 %v122_v8 }
 0x193   :  { %v124_v9 = vpop.xlane.xlu0 %123 }
 0x194   :  { %v125_v10 = vsub.f32 %v117_v6, %v124_v9 }
 0x196   :  { %v126_v11 = vmul.f32 1.442695, %v125_v10 }
 0x198   :  { %262 = vpow2.f32 %v126_v11 }
 0x1a2   :  { %v263_v12 = vpop.eup %262 }
 0x1a3   :  { %245 = vmatmul.mubr.msk.f32.vlgmr.msra.gmra.mrb[0].mxu1 %vm121_vm3, %v263_v12  ;;  %v128_v13 = vsel %vm121_vm3, %v263_v12, 0.0 }
 0x1a4   :  { %129 = vadd.xlane.f32.xlu0 %v128_v13 }
 0x231   :  { %v130_v14 = vpop.xlane.xlu0 %129 }
 0x232   :  { %264 = vrcp.f32 %v130_v14 }
 0x23c   :  { %v265_v15 = vpop.eup %264 }
 0x276   :  { %v200_v16 = vpop.f32.mrb[0].mxu1 }
 0x277   :  { %v205_v17 = vmul.f32 %v265_v15, %v200_v16  ;;  %v246_v18 = vpop.f32.mrb[1].mxu1 }
 0x279   :  { %206 = vst.msk [vmem:[#allocation7] sm:$0xff] %vm41_vm1, %v205_v17 }
 0x27a   :  { %321 = shalt.err (!%p318_p6)
}
 0x27b   :  { %s322_s10 = scalar_lea.hbm %s410_s2, 128 }
 0x27c   :  { %p323_p7 = scmp.ne.s32.totalorder %s410_s2, %s322_s10  ;;  %p326_p8 = scmp.lt.u32.totalorder %s322_s10, %s410_s2 }
 0x27e   :  { %p328_p9 = pnand %p326_p8, %p323_p7 }
 0x280   :  { %331 = shalt.err (!%p328_p9)
}
 0x281   :  { %216 = dma.vmem_to_hbm [thread:$0]  %s214_s6, 128, %s410_s2, [#allocation4]  }
 0x282   :  { %336 = dma.done.wait [#allocation4], 128  }
 0x283   :  { %337 = vsyncadd [#allocation4], 4294967168 }
 0x284   :  { %220 = vsyncpa [#allocation3], 1 }
 0x285   :  { %221 = vsyncpa [#allocation6], 1 }
 0x286   :  { %222 = vsyncpa [#allocation4], 1 }

</bundles_post_ra>
